<compile_context>
chip_gen: v6e
topology: v6e:2x2x1
jax: 0.10.0
libtpu: 0.0.40
codegen_flags: <defaults>
</compile_context>

<pallas_src>
import functools

import numpy as np
import jax
import jax.numpy as jnp
from jax import lax
from jax.experimental import pallas as pl
from jax.experimental.pallas import tpu as pltpu

_BLOCK_BYTES = 4 * 1024 * 1024      # target per-grid-step output block
_VMEM_LIMIT = 32 * 1024 * 1024      # explicit scoped-VMEM limit (safe on v5e/v6e/v7x)


def _pick_group_rows(total_rows: int) -> int:
    """Rows per group (middle axis R).  Multiple of 8 when possible, capped at 128,
    and small enough that NH = ceil(total_rows/R) leaves the grid several blocks."""
    if total_rows <= 8:
        return max(1, total_rows)
    r = (total_rows // 64) * 8          # ~ total_rows/8, rounded down to a mult of 8
    return int(min(128, max(8, r)))


def _pick_group_tile(nh: int, rows: int, cols: int) -> int:
    """Groups per grid step: block <= _BLOCK_BYTES and >= ~4 grid blocks when NH
    allows (v7x megacore sharding + writeback pipelining); never a 1-block grid
    unless NH == 1."""
    budget = max(1, _BLOCK_BYTES // (4 * rows * cols))
    gt = max(1, min(budget, nh // 4))
    return min(gt, nh)


def _host_factor_tables(nh: int, cols: int, rows: int, d_hid: int, per_row: int):
    """Float64 host precompute of the angle-addition factor tables.

    Element (g, r, lane) of the padded table corresponds to position
      p = g*(rows*per_row) + (r*per_row + lane//d_hid)   and   j = lane % d_hid,
    so  table = U1*Bc + U2*Bs  with parity (sin vs cos column) folded into U1/U2.
    """
    lane = np.arange(cols)
    j = lane % d_hid
    denom = np.power(10000.0, 2.0 * (j // 2) / d_hid)            # float64
    lane_pos = lane // d_hid
    odd = (j % 2) == 1

    g = np.arange(nh, dtype=np.float64)[:, None]
    a = (g * (rows * per_row)) / denom[None, :]                  # (NH, C)
    u1 = np.where(odd, np.cos(a), np.sin(a))
    u2 = np.where(odd, -np.sin(a), np.cos(a))

    r = np.arange(rows, dtype=np.float64)[:, None]
    b = (r * per_row + lane_pos[None, :]) / denom[None, :]       # (R, C)
    bc, bs = np.cos(b), np.sin(b)

    as_f32 = lambda t, shp: jnp.asarray(t.astype(np.float32).reshape(shp))
    return (as_f32(u1, (nh, 1, cols)), as_f32(u2, (nh, 1, cols)),
            as_f32(bc, (1, rows, cols)), as_f32(bs, (1, rows, cols)))


def _pos_enc_kernel(u1_ref, u2_ref, bc_ref, bs_ref, o_ref):
    # sin/cos(A+B) from precomputed factors: no transcendentals, ~3 VALU ops per
    # element -> HBM-writeback-bound on v5e/v6e/v7x.
    val = u1_ref[...] * bc_ref[...] + u2_ref[...] * bs_ref[...]
    o_ref[...] = val.astype(o_ref.dtype)


@functools.lru_cache(maxsize=None)
def sinusoid_table(seq: int, d_hid: int, dtype=jnp.float32) -> jax.Array:
    """Builds the (1, seq, d_hid) sinusoid table with a Pallas TPU kernel.

    Memoized: call it at model init (register_buffer analogue) and slice per step.
    `dtype=jnp.bfloat16` halves the writeback if the consumer runs in bf16.
    """
    n = seq * d_hid
    flat_ok = (d_hid < 128) and (128 % d_hid == 0)
    if flat_ok:
        # Lane-dense flattened layout: (total_rows, 128), flat index = p*d_hid + j.
        cols, per_row = 128, 128 // d_hid
        total_rows = pl.cdiv(n, 128)
    else:
        # TODO(synk): d_hid > 128 and not a multiple of 128 still pads lanes.
        cols, per_row = d_hid, 1
        total_rows = seq

    rows = _pick_group_rows(total_rows)          # R: positions-rows per group
    nh = pl.cdiv(total_rows, rows)               # number of groups (may pad rows)
    gt = _pick_group_tile(nh, rows, cols)        # groups per grid step

    u1, u2, bc, bs = _host_factor_tables(nh, cols, rows, d_hid, per_row)

    grp_spec = pl.BlockSpec((gt, 1, cols), lambda i: (i, 0, 0))    # per-group factors
    off_spec = pl.BlockSpec((1, rows, cols), lambda i: (0, 0, 0))  # resident, constant

    table3 = pl.pallas_call(
        _pos_enc_kernel,
        out_shape=jax.ShapeDtypeStruct((nh, rows, cols), dtype),
        grid=(pl.cdiv(nh, gt),),
        in_specs=[grp_spec, grp_spec, off_spec, off_spec],
        out_specs=pl.BlockSpec((gt, rows, cols), lambda i: (i, 0, 0)),
        compiler_params=pltpu.CompilerParams(
            dimension_semantics=("parallel",),
            vmem_limit_bytes=_VMEM_LIMIT),
        cost_estimate=pl.CostEstimate(
            flops=3 * nh * rows * cols,
            transcendentals=0,
            bytes_accessed=4 * (nh * rows * cols + 2 * nh * cols + 2 * rows * cols)),
    )(u1, u2, bc, bs)

    # Pure layout plumbing in the wrapper (row-major flatten matches p*d_hid + j);
    # the slice only copies when padding groups exist.
    flat = table3.reshape(-1)[:n]
    return flat.reshape(1, seq, d_hid)


class PositionalEncoding:
    """Mirror of the PyTorch module: the table is built once here; __call__ slices."""

    def __init__(self, d_hid: int, seq_length: int, dtype=jnp.float32):
        self.pos_table = sinusoid_table(seq_length, d_hid, dtype)

    def __call__(self, x: jax.Array) -> jax.Array:
        # .clone().detach() analogue: slice + stop_gradient (no kernel launch here).
        return lax.stop_gradient(self.pos_table[:, : x.shape[1]])


def positional_encoding(x: jax.Array, d_hid: int) -> jax.Array:
    """Functional forward: memoized table build + slice."""
    return lax.stop_gradient(sinusoid_table(x.shape[1], d_hid))


def _numpy_reference(seq_length: int, d_hid: int) -> np.ndarray:
    def get_position_angle_vec(position):
        return [position / np.power(10000, 2 * (hid_j // 2) / d_hid)
                for hid_j in range(d_hid)]
    table = np.array([get_position_angle_vec(p) for p in range(seq_length)])
    table[:, 0::2] = np.sin(table[:, 0::2])
    table[:, 1::2] = np.cos(table[:, 1::2])
    return table[None].astype(np.float32)


if __name__ == "__main__":
    key = jax.random.PRNGKey(0)

    # Module-shaped test (lane-dense flat path): d_hid=32, table built for
    # seq_length=16, forward on x with seq=8 (exercises the init-then-slice path).
    batch, seq, d_hid, seq_length = 2, 8, 32, 16
    x = jax.random.normal(key, (batch, seq, d_hid), dtype=jnp.float32)
    pe = PositionalEncoding(d_hid, seq_length)
    out = jax.block_until_ready(pe(x))
    ref = _numpy_reference(seq_length, d_hid)[:, :seq]
    assert out.shape == ref.shape, (out.shape, ref.shape)
    np.testing.assert_allclose(np.asarray(out), ref, rtol=1e-5, atol=1e-5)

    # 2-D path (d_hid=160 is not a divisor of 128), multi-block grid.
    out2 = jax.block_until_ready(sinusoid_table(24, 160))
    np.testing.assert_allclose(np.asarray(out2), _numpy_reference(24, 160),
                               rtol=1e-5, atol=1e-5)

    # Lane-dense flat path with group padding (seq*d_hid not a multiple of 128*R).
    out3 = jax.block_until_ready(sinusoid_table(50, 32))
    np.testing.assert_allclose(np.asarray(out3), _numpy_reference(50, 32),
                               rtol=1e-5, atol=1e-5)

    # Large-seq accuracy check (review correctness concern): the precomputed-factor
    # formulation keeps absolute error ~5e-7 even at pos ~ 2048.
    out4 = jax.block_until_ready(sinusoid_table(2048, 64))
    np.testing.assert_allclose(np.asarray(out4), _numpy_reference(2048, 64),
                               rtol=1e-5, atol=1e-5)

    print("KERNEL_OK")
</pallas_src>

<mosaic_0001>
module attributes {stable_mosaic.version = 11 : i64} {
  func.func @_pos_enc_kernel(%arg0: i32, %arg1: memref<1x1x128xf32, #tpu.memory_space<vmem>>, %arg2: memref<1x1x128xf32, #tpu.memory_space<vmem>>, %arg3: memref<1x4x128xf32, #tpu.memory_space<vmem>>, %arg4: memref<1x4x128xf32, #tpu.memory_space<vmem>>, %arg5: memref<1x4x128xf32, #tpu.memory_space<vmem>>) attributes {dimension_semantics = [#tpu.dimension_semantics<parallel>], iteration_bounds = array<i64: 1>, scalar_prefetch = 0 : i64, scratch_operands = 0 : i64, tpu.core_type = #tpu.core_type<tc>, window_params = [{transform_indices = @transform_0, window_bounds = array<i64: 1, 1, 128>}, {transform_indices = @transform_1, window_bounds = array<i64: 1, 1, 128>}, {pipeline_mode = #tpu.pipeline_mode<synchronous>, transform_indices = @transform_2, window_bounds = array<i64: 1, 4, 128>}, {pipeline_mode = #tpu.pipeline_mode<synchronous>, transform_indices = @transform_3, window_bounds = array<i64: 1, 4, 128>}, {transform_indices = @transform_4, window_bounds = array<i64: 1, 4, 128>}]} {
    %c0 = arith.constant 0 : index
    %c0_0 = arith.constant 0 : index
    %c0_1 = arith.constant 0 : index
    %0 = vector.load %arg1[%c0, %c0_0, %c0_1] : memref<1x1x128xf32, #tpu.memory_space<vmem>>, vector<1x1x128xf32>
    %c0_2 = arith.constant 0 : index
    %c0_3 = arith.constant 0 : index
    %c0_4 = arith.constant 0 : index
    %1 = vector.load %arg3[%c0_2, %c0_3, %c0_4] : memref<1x4x128xf32, #tpu.memory_space<vmem>>, vector<1x4x128xf32>
    %2 = vector.broadcast %0 : vector<1x1x128xf32> to vector<1x4x128xf32>
    %3 = arith.mulf %2, %1 : vector<1x4x128xf32>
    %c0_5 = arith.constant 0 : index
    %c0_6 = arith.constant 0 : index
    %c0_7 = arith.constant 0 : index
    %4 = vector.load %arg2[%c0_5, %c0_6, %c0_7] : memref<1x1x128xf32, #tpu.memory_space<vmem>>, vector<1x1x128xf32>
    %c0_8 = arith.constant 0 : index
    %c0_9 = arith.constant 0 : index
    %c0_10 = arith.constant 0 : index
    %5 = vector.load %arg4[%c0_8, %c0_9, %c0_10] : memref<1x4x128xf32, #tpu.memory_space<vmem>>, vector<1x4x128xf32>
    %6 = vector.broadcast %4 : vector<1x1x128xf32> to vector<1x4x128xf32>
    %7 = arith.mulf %6, %5 : vector<1x4x128xf32>
    %8 = arith.addf %3, %7 : vector<1x4x128xf32>
    %c0_11 = arith.constant 0 : index
    %c0_12 = arith.constant 0 : index
    %c0_13 = arith.constant 0 : index
    %9 = vector.load %arg5[%c0_11, %c0_12, %c0_13] : memref<1x4x128xf32, #tpu.memory_space<vmem>>, vector<1x4x128xf32>
    tpu.vector_store %arg5[%c0_11, %c0_12, %c0_13], %8 {strides = array<i32>} : memref<1x4x128xf32, #tpu.memory_space<vmem>>, vector<1x4x128xf32>,
    return
  }
  func.func @transform_0(%arg0: i32) -> (i32, i32, i32) {
    %c0_i32 = arith.constant 0 : i32
    %c0_i32_0 = arith.constant 0 : i32
    %c0_i32_1 = arith.constant 0 : i32
    return %arg0, %c0_i32, %c0_i32_0 : i32, i32, i32
  }
  func.func @transform_1(%arg0: i32) -> (i32, i32, i32) {
    %c0_i32 = arith.constant 0 : i32
    %c0_i32_0 = arith.constant 0 : i32
    %c0_i32_1 = arith.constant 0 : i32
    return %arg0, %c0_i32, %c0_i32_0 : i32, i32, i32
  }
  func.func @transform_2(%arg0: i32) -> (i32, i32, i32) {
    %c0_i32 = arith.constant 0 : i32
    %c0_i32_0 = arith.constant 0 : i32
    %c0_i32_1 = arith.constant 0 : i32
    %c0_i32_2 = arith.constant 0 : i32
    return %c0_i32, %c0_i32_0, %c0_i32_1 : i32, i32, i32
  }
  func.func @transform_3(%arg0: i32) -> (i32, i32, i32) {
    %c0_i32 = arith.constant 0 : i32
    %c0_i32_0 = arith.constant 0 : i32
    %c0_i32_1 = arith.constant 0 : i32
    %c0_i32_2 = arith.constant 0 : i32
    return %c0_i32, %c0_i32_0, %c0_i32_1 : i32, i32, i32
  }
  func.func @transform_4(%arg0: i32) -> (i32, i32, i32) {
    %c0_i32 = arith.constant 0 : i32
    %c0_i32_0 = arith.constant 0 : i32
    %c0_i32_1 = arith.constant 0 : i32
    return %arg0, %c0_i32, %c0_i32_0 : i32, i32, i32
  }
}

</mosaic_0001>

<bundles_post_ra>
// kernel: tpu_custom_call.1
= control target key start
LH: loop header
LB: loop body
LE: loop exit
PB: predicated region body
PF: predicated region fallthrough
CT: control target
= control target key end

     0   :  { %9 = vsyncpa [#allocation3], 0  ;;  %s192_s0 = inlined_call_operand.hbm [shape: f32[1,1,128], index: 0, kind: input, shape index: {}]   ;;  %s193_s1 = inlined_call_operand.vmem [shape: f32[1,1,128], index: 1, kind: input, shape index: {}]   ;;  %s194_s2 = inlined_call_operand.hbm [shape: f32[1,4,128], index: 2, kind: input, shape index: {}]   ;;  %s195_s3 = inlined_call_operand.vmem [shape: f32[1,4,128], index: 3, kind: input, shape index: {}]   ;;  %s196_s4 = inlined_call_operand.hbm [shape: f32[1,4,128], index: 4, kind: output, shape index: {}]  }
   0x1   :  { %10 = vsyncpa [#allocation6], 0 }
   0x2   :  { %11 = vsyncpa [#allocation4], 0  ;;  %s149_s15 = smov [#allocation2]   ;;  %s150_s17 = smov [#allocation5]  }
   0x3   :  { %s18_s16 = sshll.u32 %s149_s15, 4  ;;  %s30_s18 = sshll.u32 %s150_s17, 4  ;;  %s19_s16 = int_to_ptr.vmem [resolvable:$true] %s18_s16  ;;  %s31_s18 = int_to_ptr.vmem [resolvable:$true] %s30_s18 }
   0x4   :  { %s91_s19 = scalar_lea.vmem %s19_s16, 16  ;;  %s95_s20 = scalar_lea.vmem %s19_s16, 32 }
   0x5   :  { %p92_p0 = scmp.ne.s32.totalorder %s19_s16, %s91_s19  ;;  %p96_p1 = scmp.lt.s32.totalorder %s19_s16, %s19_s16 }
   0x6   :  { %p97_p2 = scmp.lt.s32.totalorder %s95_s20, %s91_s19 }
   0x8   :  { %p98_p3 = por %p97_p2, %p96_p1 }
   0xa   :  { %p99_p4 = pnand %p98_p3, %p92_p0 }
   0xc   :  { %102 = shalt.err (!%p99_p4)
}
   0xd   :  { %21 = dma.hbm_to_vmem [thread:$0]  %s192_s0, 16, %s19_s16, [#allocation3]  }
   0xe   :  { %s111_s23 = scalar_lea.vmem %s31_s18, 64  ;;  %p116_p6 = scmp.lt.s32.totalorder %s31_s18, %s31_s18 }
   0xf   :  { %p112_p5 = scmp.ne.s32.totalorder %s31_s18, %s111_s23  ;;  %p117_p7 = scmp.lt.s32.totalorder %s111_s23, %s111_s23 }
  0x11   :  { %p118_p8 = por %p117_p7, %p116_p6 }
  0x13   :  { %p119_p9 = pnand %p118_p8, %p112_p5 }
  0x15   :  { %122 = shalt.err (!%p119_p9)
}
  0x16   :  { %33 = dma.hbm_to_vmem [thread:$0]  %s194_s2, 64, %s31_s18, [#allocation6]  }
  0x17   :  { %143 = dma.done.wait [#allocation3], 16  }
  0x18   :  { %144 = vsyncadd [#allocation3], 4294967280 }
  0x19   :  { %145 = dma.done.wait [#allocation6], 64  }
  0x1a   :  { %146 = vsyncadd [#allocation6], 4294967232  ;;  %v78_v0 = vld [vmem:[#allocation2] ss:$0 sm:$0xff]  ;;  %v43_v1 = vld [vmem:[#allocation5] sm:$0xf] }
  0x1b   :  { %v79_v2 = vld [vmem:[%s193_s1] ss:$0 sm:$0xff]  ;;  %v50_v3 = vmul.f32 %v78_v0, %v43_v1  ;;  %s151_s29 = smov [#allocation7]  }
  0x1c   :  { %v52_v4 = vld [vmem:[%s195_s3] sm:$0xf]  ;;  %s68_s30 = sshll.u32 %s151_s29, 4  ;;  %s69_s30 = int_to_ptr.vmem [resolvable:$true] %s68_s30 }
  0x1d   :  { %v59_v5 = vmul.f32 %v79_v2, %v52_v4  ;;  %s123_s2 = scalar_lea.vmem %s69_s30, 64  ;;  %p128_p11 = scmp.lt.s32.totalorder %s69_s30, %s69_s30 }
  0x1e   :  { %p124_p10 = scmp.ne.s32.totalorder %s69_s30, %s123_s2  ;;  %p129_p12 = scmp.lt.s32.totalorder %s123_s2, %s123_s2 }
  0x1f   :  { %v60_v6 = vadd.f32 %v59_v5, %v50_v3 }
  0x20   :  { %p130_p13 = por %p129_p12, %p128_p11 }
  0x21   :  { %61 = vst [vmem:[#allocation7] sm:$0xf] %v60_v6 }
  0x22   :  { %p131_p0 = pnand %p130_p13, %p124_p10 }
  0x24   :  { %134 = shalt.err (!%p131_p0)
}
  0x25   :  { %71 = dma.vmem_to_hbm [thread:$0]  %s69_s30, 64, %s196_s4, [#allocation4]  }
  0x26   :  { %147 = dma.done.wait [#allocation4], 64  }
  0x27   :  { %148 = vsyncadd [#allocation4], 4294967232 }
  0x28   :  { %75 = vsyncpa [#allocation3], 1 }
  0x29   :  { %76 = vsyncpa [#allocation6], 1 }
  0x2a   :  { %77 = vsyncpa [#allocation4], 1 }

</bundles_post_ra>
